<compile_context>
chip_gen: v7x
topology: tpu7x:2x2x1
jax: 0.10.0
libtpu: 0.0.40
codegen_flags: <defaults>
</compile_context>

<pallas_src>
import functools
import math

import jax
import jax.numpy as jnp
import numpy as np
from jax.experimental import pallas as pl
from jax.experimental.pallas import tpu as pltpu

# ----- small, forward-implied problem sizes --------------------------------
BATCH = 2
SEQ = 8
EMBED = 32
NUM_HEADS = 4
HEAD_DIM = EMBED // NUM_HEADS
EPS = 1e-5  # PyTorch nn.LayerNorm default

# Row indices inside the (8, 128) packed small-parameter block.  Every
# parameter lives in its own row starting at lane 0 (zero-padded to 128 lanes),
# so in-kernel reads are sublane selects, never cross-lane rotates.
(_ROW_LN1G, _ROW_LN1B, _ROW_BQKV, _ROW_BOUT,
 _ROW_LN2G, _ROW_LN2B, _ROW_B1, _ROW_B2) = range(8)
_PVEC_ROWS = 8
_PVEC_LANES = 128


def _layernorm(x, g, b):
    mean = jnp.mean(x, axis=-1, keepdims=True)
    var = jnp.mean((x - mean) ** 2, axis=-1, keepdims=True)  # biased, like PyTorch
    return (x - mean) * jax.lax.rsqrt(var + EPS) * g + b


def clip_layer_kernel(x_ref, pvec_ref, wqkv_ref, wo_ref, w1_ref, w2_ref, o_ref,
                      *, batch, seq, num_heads):
    D = x_ref.shape[-1]
    dh = D // num_heads
    n_tok = batch * seq
    G = batch * num_heads

    x = x_ref[...]            # (B*S, D) fp32 — batch folded into rows for all matmuls
    pv = pvec_ref[...]        # (8, 128) packed small params, one per row

    ln1_g = pv[_ROW_LN1G:_ROW_LN1G + 1, :D]
    ln1_b = pv[_ROW_LN1B:_ROW_LN1B + 1, :D]
    b_qkv = pv[_ROW_BQKV:_ROW_BQKV + 1, :3 * D]
    b_out = pv[_ROW_BOUT:_ROW_BOUT + 1, :D]
    ln2_g = pv[_ROW_LN2G:_ROW_LN2G + 1, :D]
    ln2_b = pv[_ROW_LN2B:_ROW_LN2B + 1, :D]
    b1 = pv[_ROW_B1:_ROW_B1 + 1, :4 * D]
    b2 = pv[_ROW_B2:_ROW_B2 + 1, :D]

    # (B*S, H*dh) -> (B*H, S, dh): one reshape+transpose (no per-head slices/stack).
    def split_heads(t):
        t = t.reshape(batch, seq, num_heads, dh)
        t = jnp.transpose(t, (0, 2, 1, 3))
        return t.reshape(G, seq, dh)

    # (B*H, S, dh) -> (B*S, H*dh): inverse single reshape+transpose (no lane concat).
    def merge_heads(t):
        t = t.reshape(batch, num_heads, seq, dh)
        t = jnp.transpose(t, (0, 2, 1, 3))
        return t.reshape(n_tok, D)

    res = x

    # ---- LayerNorm 1 ----
    h = _layernorm(x, ln1_g, ln1_b)

    # ---- Self-attention ----
    qkv = jnp.dot(h, wqkv_ref[...], preferred_element_type=jnp.float32) + b_qkv
    scale = 1.0 / math.sqrt(dh)
    q = split_heads(qkv[:, 0:D] * scale)      # fold 1/sqrt(dh) into q
    k = split_heads(qkv[:, D:2 * D])
    v = split_heads(qkv[:, 2 * D:3 * D])

    # Batch kept as an attention axis (merged with heads into G=B*H), so no
    # block-diagonal mask / iota / where is needed: each (b, h) slab only ever
    # attends within its own sequence.
    scores = jnp.einsum('gqd,gkd->gqk', q, k, preferred_element_type=jnp.float32)  # (G, S, S)
    m = jnp.max(scores, axis=-1, keepdims=True)
    e = jnp.exp(scores - m)
    denom = jnp.sum(e, axis=-1, keepdims=True)
    p = e * pl.reciprocal(denom, approx=True)       # EUP reciprocal instead of a VPU divide

    ctx = jnp.einsum('gqk,gkd->gqd', p, v, preferred_element_type=jnp.float32)     # (G, S, dh)
    attn = merge_heads(ctx)                                                        # (B*S, D)
    attn = jnp.dot(attn, wo_ref[...], preferred_element_type=jnp.float32) + b_out

    # ---- residual 1 ----
    x = attn + res
    res = x

    # ---- LayerNorm 2 + MLP with QuickGELU ----
    h = _layernorm(x, ln2_g, ln2_b)
    h = jnp.dot(h, w1_ref[...], preferred_element_type=jnp.float32) + b1
    h = h * jax.nn.sigmoid(1.702 * h)
    h = jnp.dot(h, w2_ref[...], preferred_element_type=jnp.float32) + b2

    # ---- residual 2 ----
    # (16, 32) output -> masked partial stores; acceptable at toy size (review:
    # not worth in-kernel layout work; at real D this becomes lane-dense anyway).
    o_ref[...] = h + res


def build_clip_layer(batch, seq, embed, num_heads):
    """Returns a jitted callable clip_layer(x, pvec, w_qkv, w_out, w1, w2)."""
    kernel = functools.partial(clip_layer_kernel, batch=batch, seq=seq,
                               num_heads=num_heads)
    vmem = pltpu.MemorySpace.VMEM
    call = pl.pallas_call(
        kernel,
        out_shape=jax.ShapeDtypeStruct((batch * seq, embed), jnp.float32),
        # Whole arrays resident in VMEM — fine at these sizes on all generations.
        in_specs=[pl.BlockSpec(memory_space=vmem)] * 6,
        out_specs=pl.BlockSpec(memory_space=vmem),
    )

    @jax.jit
    def run(x, pvec, w_qkv, w_out, w1, w2):
        xf = x.reshape(batch * seq, embed)   # collapse batch into rows (free, wrapper-side)
        out = call(xf, pvec, w_qkv, w_out, w1, w2)
        return out.reshape(batch, seq, embed)

    return run


def pack_small_params(p):
    """Pack the eight small (1, width) params into one (8, 128) row-per-param
    block.  Called ONCE, outside the per-step path."""
    def row(v):
        v = jnp.asarray(v, jnp.float32).reshape(1, -1)
        return jnp.pad(v, ((0, 0), (0, _PVEC_LANES - v.shape[1])))
    pvec = jnp.concatenate(
        [row(p["ln1_g"]), row(p["ln1_b"]), row(p["b_qkv"]), row(p["b_out"]),
         row(p["ln2_g"]), row(p["ln2_b"]), row(p["b1"]), row(p["b2"])], axis=0)
    assert pvec.shape == (_PVEC_ROWS, _PVEC_LANES)
    return pvec


def make_params(key):
    """Deterministic synthetic parameters. PyTorch Linear weights are (out,in);
    we store them pre-transposed to (in,out) so the kernel does x @ W + b."""
    ks = jax.random.split(key, 8)
    s = 0.05
    D, H4 = EMBED, 4 * EMBED
    params = {
        "ln1_g": jnp.ones((1, D), jnp.float32),
        "ln1_b": jnp.zeros((1, D), jnp.float32),
        "w_qkv": s * jax.random.normal(ks[0], (D, 3 * D), jnp.float32),
        "b_qkv": s * jax.random.normal(ks[1], (1, 3 * D), jnp.float32),
        "w_out": s * jax.random.normal(ks[2], (D, D), jnp.float32),
        "b_out": s * jax.random.normal(ks[3], (1, D), jnp.float32),
        "ln2_g": jnp.ones((1, D), jnp.float32),
        "ln2_b": jnp.zeros((1, D), jnp.float32),
        "w1": s * jax.random.normal(ks[4], (D, H4), jnp.float32),
        "b1": s * jax.random.normal(ks[5], (1, H4), jnp.float32),
        "w2": s * jax.random.normal(ks[6], (H4, D), jnp.float32),
        "b2": s * jax.random.normal(ks[7], (1, D), jnp.float32),
    }
    return params


def clip_layer_ref(x, p):
    """Pure-JAX reference mirroring the PyTorch forward, for a correctness check."""
    def ln(v, g, b):
        m = jnp.mean(v, -1, keepdims=True)
        var = jnp.mean((v - m) ** 2, -1, keepdims=True)
        return (v - m) / jnp.sqrt(var + EPS) * g + b

    res = x
    h = ln(x, p["ln1_g"], p["ln1_b"])
    qkv = h @ p["w_qkv"] + p["b_qkv"]
    q, k, v = jnp.split(qkv, 3, axis=-1)
    B, S, D = x.shape
    q = q.reshape(B, S, NUM_HEADS, HEAD_DIM).transpose(0, 2, 1, 3)
    k = k.reshape(B, S, NUM_HEADS, HEAD_DIM).transpose(0, 2, 1, 3)
    v = v.reshape(B, S, NUM_HEADS, HEAD_DIM).transpose(0, 2, 1, 3)
    sc = jnp.einsum("bhqd,bhkd->bhqk", q, k) / math.sqrt(HEAD_DIM)
    pattn = jax.nn.softmax(sc, axis=-1)
    o = jnp.einsum("bhqk,bhkd->bhqd", pattn, v).transpose(0, 2, 1, 3).reshape(B, S, D)
    o = o @ p["w_out"] + p["b_out"]
    x = o + res
    res = x
    h = ln(x, p["ln2_g"], p["ln2_b"])
    h = h @ p["w1"] + p["b1"]
    h = h * jax.nn.sigmoid(1.702 * h)
    h = h @ p["w2"] + p["b2"]
    return h + res


if __name__ == "__main__":
    key = jax.random.PRNGKey(0)
    kx, kp = jax.random.split(key)
    x = jax.random.normal(kx, (BATCH, SEQ, EMBED), jnp.float32)
    params = make_params(kp)

    pvec = pack_small_params(params)              # packed once, outside the call path
    clip_layer = build_clip_layer(BATCH, SEQ, EMBED, NUM_HEADS)

    out = jax.block_until_ready(
        clip_layer(x, pvec, params["w_qkv"], params["w_out"], params["w1"], params["w2"]))
    ref = jax.block_until_ready(clip_layer_ref(x, params))

    # Tolerance covers the EUP approx-reciprocal in the softmax.
    np.testing.assert_allclose(np.asarray(out), np.asarray(ref), rtol=2e-4, atol=2e-4)

    print("KERNEL_OK")
</pallas_src>

<mosaic_0001>
module attributes {stable_mosaic.version = 11 : i64} {
  func.func @clip_layer_kernel(%arg0: memref<16x32xf32, #tpu.memory_space<vmem>>, %arg1: memref<8x128xf32, #tpu.memory_space<vmem>>, %arg2: memref<32x96xf32, #tpu.memory_space<vmem>>, %arg3: memref<32x32xf32, #tpu.memory_space<vmem>>, %arg4: memref<32x128xf32, #tpu.memory_space<vmem>>, %arg5: memref<128x32xf32, #tpu.memory_space<vmem>>, %arg6: memref<16x32xf32, #tpu.memory_space<vmem>>) attributes {dimension_semantics = [], scalar_prefetch = 0 : i64, scratch_operands = 0 : i64, tpu.core_type = #tpu.core_type<tc>} {
    %c0 = arith.constant 0 : index
    %c0_0 = arith.constant 0 : index
    %0 = vector.load %arg0[%c0, %c0_0] : memref<16x32xf32, #tpu.memory_space<vmem>>, vector<16x32xf32>
    %c0_1 = arith.constant 0 : index
    %c0_2 = arith.constant 0 : index
    %1 = vector.load %arg1[%c0_1, %c0_2] : memref<8x128xf32, #tpu.memory_space<vmem>>, vector<8x128xf32>
    %2 = vector.extract_strided_slice %1 {offsets = [0, 0], sizes = [1, 32], strides = [1, 1]} : vector<8x128xf32> to vector<1x32xf32>
    %3 = vector.extract_strided_slice %1 {offsets = [1, 0], sizes = [1, 32], strides = [1, 1]} : vector<8x128xf32> to vector<1x32xf32>
    %4 = vector.extract_strided_slice %1 {offsets = [2, 0], sizes = [1, 96], strides = [1, 1]} : vector<8x128xf32> to vector<1x96xf32>
    %5 = vector.extract_strided_slice %1 {offsets = [3, 0], sizes = [1, 32], strides = [1, 1]} : vector<8x128xf32> to vector<1x32xf32>
    %6 = vector.extract_strided_slice %1 {offsets = [4, 0], sizes = [1, 32], strides = [1, 1]} : vector<8x128xf32> to vector<1x32xf32>
    %7 = vector.extract_strided_slice %1 {offsets = [5, 0], sizes = [1, 32], strides = [1, 1]} : vector<8x128xf32> to vector<1x32xf32>
    %8 = vector.extract_strided_slice %1 {offsets = [6, 0], sizes = [1, 128], strides = [1, 1]} : vector<8x128xf32> to vector<1x128xf32>
    %9 = vector.extract_strided_slice %1 {offsets = [7, 0], sizes = [1, 32], strides = [1, 1]} : vector<8x128xf32> to vector<1x32xf32>
    %cst = arith.constant dense<0.000000e+00> : vector<16xf32>
    %10 = vector.multi_reduction <add>, %0, %cst [1] : vector<16x32xf32> to vector<16xf32>
    %11 = vector.shape_cast %10 : vector<16xf32> to vector<16x1xf32>
    %cst_3 = arith.constant 3.200000e+01 : f32
    %12 = vector.broadcast %cst_3 : f32 to vector<16x1xf32>
    %13 = arith.divf %11, %12 : vector<16x1xf32>
    %14 = vector.broadcast %13 : vector<16x1xf32> to vector<16x32xf32>
    %15 = arith.subf %0, %14 : vector<16x32xf32>
    %16 = arith.mulf %15, %15 : vector<16x32xf32>
    %cst_4 = arith.constant dense<0.000000e+00> : vector<16xf32>
    %17 = vector.multi_reduction <add>, %16, %cst_4 [1] : vector<16x32xf32> to vector<16xf32>
    %18 = vector.shape_cast %17 : vector<16xf32> to vector<16x1xf32>
    %cst_5 = arith.constant 3.200000e+01 : f32
    %19 = vector.broadcast %cst_5 : f32 to vector<16x1xf32>
    %20 = arith.divf %18, %19 : vector<16x1xf32>
    %21 = vector.broadcast %13 : vector<16x1xf32> to vector<16x32xf32>
    %22 = arith.subf %0, %21 : vector<16x32xf32>
    %cst_6 = arith.constant 9.99999974E-6 : f32
    %23 = vector.broadcast %cst_6 : f32 to vector<16x1xf32>
    %24 = arith.addf %20, %23 : vector<16x1xf32>
    %25 = math.rsqrt %24 : vector<16x1xf32>
    %26 = vector.broadcast %25 : vector<16x1xf32> to vector<16x32xf32>
    %27 = arith.mulf %22, %26 : vector<16x32xf32>
    %28 = vector.broadcast %2 : vector<1x32xf32> to vector<16x32xf32>
    %29 = arith.mulf %27, %28 : vector<16x32xf32>
    %30 = vector.broadcast %3 : vector<1x32xf32> to vector<16x32xf32>
    %31 = arith.addf %29, %30 : vector<16x32xf32>
    %c0_7 = arith.constant 0 : index
    %c0_8 = arith.constant 0 : index
    %32 = vector.load %arg2[%c0_7, %c0_8] : memref<32x96xf32, #tpu.memory_space<vmem>>, vector<32x96xf32>
    %cst_9 = arith.constant dense<0.000000e+00> : vector<16x96xf32>
    %33 = tpu.matmul %31, %32, %cst_9 {dimension_numbers = #tpu.dot_dimension_numbers<[1], [0], [0], [1], [0, 0, 1, 1], [], []>} : vector<16x32xf32>, vector<32x96xf32>, vector<16x96xf32> -> vector<16x96xf32>
    %34 = vector.broadcast %4 : vector<1x96xf32> to vector<16x96xf32>
    %35 = arith.addf %33, %34 : vector<16x96xf32>
    %36 = vector.extract_strided_slice %35 {offsets = [0, 0], sizes = [16, 32], strides = [1, 1]} : vector<16x96xf32> to vector<16x32xf32>
    %cst_10 = arith.constant 0.353553385 : f32
    %37 = vector.broadcast %cst_10 : f32 to vector<16x32xf32>
    %38 = arith.mulf %36, %37 : vector<16x32xf32>
    %39 = vector.shape_cast %38 : vector<16x32xf32> to vector<2x8x4x8xf32>
    %40 = tpu.transpose %39, [0, 2, 1, 3] : vector<2x8x4x8xf32> -> vector<2x4x8x8xf32>
    %41 = vector.shape_cast %40 : vector<2x4x8x8xf32> to vector<8x8x8xf32>
    %42 = vector.extract_strided_slice %35 {offsets = [0, 32], sizes = [16, 32], strides = [1, 1]} : vector<16x96xf32> to vector<16x32xf32>
    %43 = vector.shape_cast %42 : vector<16x32xf32> to vector<2x8x4x8xf32>
    %44 = tpu.transpose %43, [0, 2, 1, 3] : vector<2x8x4x8xf32> -> vector<2x4x8x8xf32>
    %45 = vector.shape_cast %44 : vector<2x4x8x8xf32> to vector<8x8x8xf32>
    %46 = vector.extract_strided_slice %35 {offsets = [0, 64], sizes = [16, 32], strides = [1, 1]} : vector<16x96xf32> to vector<16x32xf32>
    %47 = vector.shape_cast %46 : vector<16x32xf32> to vector<2x8x4x8xf32>
    %48 = tpu.transpose %47, [0, 2, 1, 3] : vector<2x8x4x8xf32> -> vector<2x4x8x8xf32>
    %49 = vector.shape_cast %48 : vector<2x4x8x8xf32> to vector<8x8x8xf32>
    "tpu.trace_start"() <{level = 10 : i32, message = "gqd,gkd->gqk"}> : () -> ()
    %cst_11 = arith.constant dense<0.000000e+00> : vector<8x8x8xf32>
    %50 = tpu.matmul %41, %45, %cst_11 {dimension_numbers = #tpu.dot_dimension_numbers<[2], [2], [1], [1], [0, 0, 0, 1, 1, 1], [0], [0]>} : vector<8x8x8xf32>, vector<8x8x8xf32>, vector<8x8x8xf32> -> vector<8x8x8xf32>
    "tpu.trace_stop"() : () -> ()
    %cst_12 = arith.constant dense<0xFF800000> : vector<8x8xf32>
    %51 = vector.multi_reduction <maximumf>, %50, %cst_12 [2] : vector<8x8x8xf32> to vector<8x8xf32>
    %52 = vector.shape_cast %51 : vector<8x8xf32> to vector<8x8x1xf32>
    %53 = vector.broadcast %52 : vector<8x8x1xf32> to vector<8x8x8xf32>
    %54 = arith.subf %50, %53 : vector<8x8x8xf32>
    %55 = math.exp %54 : vector<8x8x8xf32>
    %cst_13 = arith.constant dense<0.000000e+00> : vector<8x8xf32>
    %56 = vector.multi_reduction <add>, %55, %cst_13 [2] : vector<8x8x8xf32> to vector<8x8xf32>
    %57 = vector.shape_cast %56 : vector<8x8xf32> to vector<8x8x1xf32>
    %58 = tpu.reciprocal %57 {approx = true} : vector<8x8x1xf32> -> vector<8x8x1xf32>
    %59 = vector.broadcast %58 : vector<8x8x1xf32> to vector<8x8x8xf32>
    %60 = arith.mulf %55, %59 : vector<8x8x8xf32>
    "tpu.trace_start"() <{level = 10 : i32, message = "gqk,gkd->gqd"}> : () -> ()
    %cst_14 = arith.constant dense<0.000000e+00> : vector<8x8x8xf32>
    %61 = tpu.matmul %60, %49, %cst_14 {dimension_numbers = #tpu.dot_dimension_numbers<[2], [1], [1], [2], [0, 0, 0, 1, 1, 2], [0], [0]>} : vector<8x8x8xf32>, vector<8x8x8xf32>, vector<8x8x8xf32> -> vector<8x8x8xf32>
    "tpu.trace_stop"() : () -> ()
    %62 = vector.shape_cast %61 : vector<8x8x8xf32> to vector<2x4x8x8xf32>
    %63 = tpu.transpose %62, [0, 2, 1, 3] : vector<2x4x8x8xf32> -> vector<2x8x4x8xf32>
    %64 = vector.shape_cast %63 : vector<2x8x4x8xf32> to vector<16x32xf32>
    %c0_15 = arith.constant 0 : index
    %c0_16 = arith.constant 0 : index
    %65 = vector.load %arg3[%c0_15, %c0_16] : memref<32x32xf32, #tpu.memory_space<vmem>>, vector<32x32xf32>
    %cst_17 = arith.constant dense<0.000000e+00> : vector<16x32xf32>
    %66 = tpu.matmul %64, %65, %cst_17 {dimension_numbers = #tpu.dot_dimension_numbers<[1], [0], [0], [1], [0, 0, 1, 1], [], []>} : vector<16x32xf32>, vector<32x32xf32>, vector<16x32xf32> -> vector<16x32xf32>
    %67 = vector.broadcast %5 : vector<1x32xf32> to vector<16x32xf32>
    %68 = arith.addf %66, %67 : vector<16x32xf32>
    %69 = arith.addf %68, %0 : vector<16x32xf32>
    %cst_18 = arith.constant dense<0.000000e+00> : vector<16xf32>
    %70 = vector.multi_reduction <add>, %69, %cst_18 [1] : vector<16x32xf32> to vector<16xf32>
    %71 = vector.shape_cast %70 : vector<16xf32> to vector<16x1xf32>
    %cst_19 = arith.constant 3.200000e+01 : f32
    %72 = vector.broadcast %cst_19 : f32 to vector<16x1xf32>
    %73 = arith.divf %71, %72 : vector<16x1xf32>
    %74 = vector.broadcast %73 : vector<16x1xf32> to vector<16x32xf32>
    %75 = arith.subf %69, %74 : vector<16x32xf32>
    %76 = arith.mulf %75, %75 : vector<16x32xf32>
    %cst_20 = arith.constant dense<0.000000e+00> : vector<16xf32>
    %77 = vector.multi_reduction <add>, %76, %cst_20 [1] : vector<16x32xf32> to vector<16xf32>
    %78 = vector.shape_cast %77 : vector<16xf32> to vector<16x1xf32>
    %cst_21 = arith.constant 3.200000e+01 : f32
    %79 = vector.broadcast %cst_21 : f32 to vector<16x1xf32>
    %80 = arith.divf %78, %79 : vector<16x1xf32>
    %81 = vector.broadcast %73 : vector<16x1xf32> to vector<16x32xf32>
    %82 = arith.subf %69, %81 : vector<16x32xf32>
    %cst_22 = arith.constant 9.99999974E-6 : f32
    %83 = vector.broadcast %cst_22 : f32 to vector<16x1xf32>
    %84 = arith.addf %80, %83 : vector<16x1xf32>
    %85 = math.rsqrt %84 : vector<16x1xf32>
    %86 = vector.broadcast %85 : vector<16x1xf32> to vector<16x32xf32>
    %87 = arith.mulf %82, %86 : vector<16x32xf32>
    %88 = vector.broadcast %6 : vector<1x32xf32> to vector<16x32xf32>
    %89 = arith.mulf %87, %88 : vector<16x32xf32>
    %90 = vector.broadcast %7 : vector<1x32xf32> to vector<16x32xf32>
    %91 = arith.addf %89, %90 : vector<16x32xf32>
    %c0_23 = arith.constant 0 : index
    %c0_24 = arith.constant 0 : index
    %92 = vector.load %arg4[%c0_23, %c0_24] : memref<32x128xf32, #tpu.memory_space<vmem>>, vector<32x128xf32>
    %cst_25 = arith.constant dense<0.000000e+00> : vector<16x128xf32>
    %93 = tpu.matmul %91, %92, %cst_25 {dimension_numbers = #tpu.dot_dimension_numbers<[1], [0], [0], [1], [0, 0, 1, 1], [], []>} : vector<16x32xf32>, vector<32x128xf32>, vector<16x128xf32> -> vector<16x128xf32>
    %94 = vector.broadcast %8 : vector<1x128xf32> to vector<16x128xf32>
    %95 = arith.addf %93, %94 : vector<16x128xf32>
    %cst_26 = arith.constant 1.702000e+00 : f32
    %96 = vector.broadcast %cst_26 : f32 to vector<16x128xf32>
    %97 = arith.mulf %96, %95 : vector<16x128xf32>
    %98 = arith.negf %97 : vector<16x128xf32>
    %99 = math.exp %98 : vector<16x128xf32>
    %cst_27 = arith.constant 1.000000e+00 : f32
    %100 = vector.broadcast %cst_27 : f32 to vector<16x128xf32>
    %101 = arith.addf %100, %99 : vector<16x128xf32>
    %102 = arith.divf %100, %101 : vector<16x128xf32>
    %103 = arith.mulf %95, %102 : vector<16x128xf32>
    %c0_28 = arith.constant 0 : index
    %c0_29 = arith.constant 0 : index
    %104 = vector.load %arg5[%c0_28, %c0_29] : memref<128x32xf32, #tpu.memory_space<vmem>>, vector<128x32xf32>
    %cst_30 = arith.constant dense<0.000000e+00> : vector<16x32xf32>
    %105 = tpu.matmul %103, %104, %cst_30 {dimension_numbers = #tpu.dot_dimension_numbers<[1], [0], [0], [1], [0, 0, 1, 1], [], []>} : vector<16x128xf32>, vector<128x32xf32>, vector<16x32xf32> -> vector<16x32xf32>
    %106 = vector.broadcast %9 : vector<1x32xf32> to vector<16x32xf32>
    %107 = arith.addf %105, %106 : vector<16x32xf32>
    %108 = arith.addf %107, %69 : vector<16x32xf32>
    %c0_31 = arith.constant 0 : index
    %c0_32 = arith.constant 0 : index
    %109 = vector.load %arg6[%c0_31, %c0_32] : memref<16x32xf32, #tpu.memory_space<vmem>>, vector<16x32xf32>
    tpu.vector_store %arg6[%c0_31, %c0_32], %108 {strides = array<i32>} : memref<16x32xf32, #tpu.memory_space<vmem>>, vector<16x32xf32>,
    return
  }
}

</mosaic_0001>

<bundles_post_ra>
// kernel: run.1
= control target key start
LH: loop header
LB: loop body
LE: loop exit
PB: predicated region body
PF: predicated region fallthrough
CT: control target
= control target key end

     0   :  { %vm27_vm0 = vcmask 261120   ;;  %s3994_s0 = inlined_call_operand.vmem [shape: f32[16,32], index: 0, kind: input, shape index: {}]   ;;  %s3995_s1 = inlined_call_operand.vmem [shape: f32[8,128], index: 1, kind: input, shape index: {}]   ;;  %s3996_s2 = inlined_call_operand.vmem [shape: f32[32,96], index: 2, kind: input, shape index: {}]   ;;  %s3997_s3 = inlined_call_operand.vmem [shape: f32[32,32], index: 3, kind: input, shape index: {}]   ;;  %s3998_s4 = inlined_call_operand.vmem [shape: f32[32,128], index: 4, kind: input, shape index: {}]   ;;  %s3999_s5 = inlined_call_operand.vmem [shape: f32[128,32], index: 5, kind: input, shape index: {}]   ;;  %s4000_s6 = inlined_call_operand.hbm [shape: f32[16,32], index: 6, kind: output, shape index: {}]  }
   0x1   :  { %v24_v0 = vld [vmem:[%s3994_s0] sm:$0xff]  ;;  %v25_v1 = vld [vmem:[%s3994_s0 + $0x8] sm:$0xff] }
   0x2   :  { %11 = vsyncpa [#allocation3], 0  ;;  %v28_v2 = vsel %vm27_vm0, %v24_v0, 0.0  ;;  %v31_v3 = vsel %vm27_vm0, %v25_v1, 0.0  ;;  %v67_v14 = vld [vmem:[%s3996_s2] sm:$0xff]  ;;  %v68_v15 = vld [vmem:[%s3996_s2 + $0x8] sm:$0xff]  ;;  %v55_v22 = vlaneseq }
   0x3   :  { %29 = vadd.xlane.f32.xlu0 %v28_v2  ;;  %v69_v16 = vld [vmem:[%s3996_s2 + $0x10] sm:$0xff]  ;;  %v3254_v17 = vpack.c.bf16 %v68_v15, %v67_v14  ;;  %v70_v18 = vld [vmem:[%s3996_s2 + $0x18] sm:$0xff]  ;;  %v26_v29 = vld [vmem:[%s3995_s1] sm:$0xff]  ;;  %s3399_s10 = smov 112   ;;  %s3400_s11 = smov 120   ;;  %v3403_v54 = vmov 0.0  }
   0x4   :  { %v3258_v19 = vpack.c.bf16 %v70_v18, %v69_v16  ;;  %v3470_v26 = vshrl.u32 %v55_v22, 7  ;;  %s3401_s12 = smov 104   ;;  %s3402_s13 = smov 96   ;;  %3127 = vmatprep.subr.mxu0 %v3403_v54  ;;  %vm3404_vm1 = vmmov 0   ;;  %v3405_v57 = vmov 1983009808  }
   0x5   :  { %3255 = vmatprep.subr.bf16.mxu1 %v3254_v17  ;;  %3129 = vmatprep.mubr.msk.f32.mxu0 %vm3404_vm1, %v3403_v54  ;;  %v181_v58 = vunpack.c.l.s4 %v3405_v57  ;;  %v3406_v61 = vmov 1934713408   ;;  %vm1056_vm2 = vcmask 64512   ;;  %s3407_s14 = smov 64   ;;  %s3408_s15 = smov 8   ;;  %vm2635_vm3 = vcmask 130048  }
   0x6   :  { %3257 = vmatpush3.bf16.msra.mxu1 %v3254_v17  ;;  %v57_v28 = vsub.s32 0, %v3470_v26  ;;  %v63_v30 = vsub.s32 1, %v3470_v26  ;;  %v73_v41 = vsub.s32 2, %v3470_v26  ;;  %v213_v62 = vunpack.c.l.s4 %v3406_v61  ;;  %s3409_s16 = smov 16   ;;  %s3410_s17 = smov 24  }
   0x7   :  { %32 = vadd.xlane.f32.xlu0 %v31_v3  ;;  %3259 = vmatprep.subr.bf16.mxu1 %v3258_v19  ;;  %v182_v63 = vunpack.c.0.s8 %v181_v58  ;;  %vm2638_vm4 = vcmask 195584  }
   0x8   :  { %v58_v31 = vrot.slane %v26_v29, %v57_v28  ;;  %v64_v34 = vrot.slane %v26_v29, %v63_v30  ;;  %v74_v42 = vrot.slane %v26_v29, %v73_v41  ;;  %v214_v2 = vunpack.c.0.s8 %v213_v62 }
   0xa   :  { %3261 = vmatpush3.bf16.msra.mxu1 %v3258_v19  ;;  %v3539_v14 = vsub.s32 %v214_v2, %v3470_v26 }
   0xb   :  { %3117 = vmatprep.subr.mxu1 %v3403_v54 }
  0x90   :  { %v30_v4 = vpop.xlane.xlu0 %29 }
  0x91   :  { %v35_v5 = vmul.f32 0.03125, %v30_v4 }
  0x93   :  { %v37_v6 = vsub.f32 %v24_v0, %v35_v5  ;;  %v3536_v5 = vsub.s32 %v182_v63, %v3470_v26 }
  0x94   :  { %v33_v7 = vpop.xlane.xlu0 %32 }
  0x95   :  { %v36_v8 = vmul.f32 0.03125, %v33_v7  ;;  %v39_v9 = vmul.f32 %v37_v6, %v37_v6 }
  0x97   :  { %v38_v10 = vsub.f32 %v25_v1, %v36_v8  ;;  %v41_v11 = vsel %vm27_vm0, %v39_v9, 0.0 }
  0x98   :  { %42 = vadd.xlane.f32.xlu1 %v41_v11 }
  0x99   :  { %v40_v12 = vmul.f32 %v38_v10, %v38_v10 }
  0x9b   :  { %v44_v13 = vsel %vm27_vm0, %v40_v12, 0.0 }
  0x9c   :  { %45 = vadd.xlane.f32.xlu1 %v44_v13 }
 0x125   :  { %v43_v20 = vpop.xlane.xlu1 %42 }
 0x126   :  { %v47_v21 = vmul.f32 0.03125, %v43_v20 }
 0x128   :  { %v49_v23 = vadd.f32 1e-05, %v47_v21 }
 0x129   :  { %v46_v24 = vpop.xlane.xlu1 %45 }
 0x12a   :  { %3324 = vrsqrt.f32 %v49_v23  ;;  %v48_v25 = vmul.f32 0.03125, %v46_v24 }
 0x12c   :  { %v50_v27 = vadd.f32 1e-05, %v48_v25 }
 0x12e   :  { %3326 = vrsqrt.f32 %v50_v27 }
 0x134   :  { %v3325_v32 = vpop.eup %3324 }
 0x135   :  { %v53_v33 = vmul.f32 %v3325_v32, %v37_v6 }
 0x137   :  { %v59_v35 = vmul.f32 %v58_v31, %v53_v33 }
 0x138   :  { %v3327_v36 = vpop.eup %3326 }
 0x139   :  { %v54_v37 = vmul.f32 %v3327_v36, %v38_v10  ;;  %v65_v38 = vadd.f32 %v64_v34, %v59_v35 }
 0x13b   :  { %v60_v39 = vmul.f32 %v58_v31, %v54_v37  ;;  %3114 = vmatprep.mubr.msk.f32.mxu1 %vm27_vm0, %v65_v38 }
 0x13d   :  { %v66_v40 = vadd.f32 %v64_v34, %v60_v39 }
 0x13f   :  { %3115 = vmatmul.mubr.msk.f32.vlgmr.msra.gmra.mrb[0].mxu1 %vm27_vm0, %v66_v40 }
 0x140   :  { %3119 = vmatprep.mubr.msk.f32.mxu1 %vm3404_vm1, %v3403_v54 }
 0x212   :  { %v3116_v43 = vpop.f32.mrb[0].mxu1 }
 0x213   :  { %v147_v44 = vpop.f32.mrb[1].mxu1  ;;  %v3486_v46 = vadd.f32 %v3116_v43, %v74_v42 }
 0x214   :  { %v3480_v45 = vadd.f32 %v147_v44, %v74_v42 }
 0x215   :  { %v3523_v55 = vmul.f32 0.35355338, %v3486_v46 }
 0x216   :  { %456 = vrot.lane.b32.xlu1 %v3480_v45, %s3399_s10  ;;  %452 = vrot.lane.b32.xlu0 %v3480_v45, %s3400_s11  ;;  %v156_v47 = vmul.f32 0.35355338, %v3480_v45 }
 0x21a   :  { %460 = vrot.lane.b32.xlu1 %v3480_v45, %s3401_s12  ;;  %458 = vrot.lane.b32.xlu0 %v3486_v46, %s3399_s10 }
 0x21e   :  { %454 = vrot.lane.b32.xlu1 %v3486_v46, %s3400_s11  ;;  %464 = vrot.lane.b32.xlu0 %v3480_v45, %s3402_s13 }
 0x222   :  { %462 = vrot.lane.b32.xlu1 %v3486_v46, %s3401_s12  ;;  %160 = vrot.lane.b32.xlu0 %v156_v47, %s3400_s11 }
 0x226   :  { %166 = vrot.lane.b32.xlu1 %v156_v47, %s3399_s10 }
 0x288   :  { %v3500_v48 = vpop.permute.xlu1 %456  ;;  %v3502_v49 = vpop.permute.xlu0 %452 }
 0x289   :  { %468 = vrot.lane.b32.xlu1 %v3502_v49, %s3402_s13  ;;  %472 = vrot.lane.b32.xlu0 %v3500_v48, %s3402_s13 }
 0x28c   :  { %v3506_v50 = vpop.permute.xlu1 %460  ;;  %v3514_v52 = vpop.permute.xlu0 %458 }
 0x28d   :  { %476 = vrot.lane.b32.xlu1 %v3506_v50, %s3402_s13  ;;  %172 = vrot.lane.b32.xlu0 %v156_v47, %s3401_s12 }
 0x290   :  { %v3510_v51 = vpop.permute.xlu1 %454  ;;  %v465_v56 = vpop.permute.xlu0 %464 }
 0x291   :  { %466 = vrot.lane.b32.xlu1 %v3486_v46, %s3402_s13  ;;  %470 = vrot.lane.b32.xlu0 %v3510_v51, %s3402_s13 }
 0x294   :  { %v3516_v53 = vpop.permute.xlu1 %462  ;;  %v161_v59 = vpop.permute.xlu0 %160 }
 0x295   :  { %474 = vrot.lane.b32.xlu1 %v3514_v52, %s3402_s13  ;;  %478 = vrot.lane.b32.xlu0 %v3516_v53, %s3402_s13 }
 0x298   :  { %v167_v60 = vpop.permute.xlu1 %166 }
 0x299   :  { %162 = vrot.lane.b32.xlu1 %v3523_v55, %s3400_s11  ;;  %168 = vrot.lane.b32.xlu0 %v3523_v55, %s3399_s10  ;;  %v178_v6 = vcombine.low %v156_v47, %v167_v60  ;;  %v179_v7 = vcombine.high %v156_v47, %v167_v60 }
 0x29b   :  { %v186_v21 = vrot.slane %v178_v6, %v3536_v5  ;;  %v193_v22 = vrot.slane %v179_v7, %v3536_v5 }
 0x29d   :  { %174 = vrot.lane.b32.xlu1 %v3523_v55, %s3401_s12 }
 0x2fb   :  { %v469_v0 = vpop.permute.xlu1 %468  ;;  %v473_v1 = vpop.permute.xlu0 %472 }
 0x2fc   :  { %v488_v3 = vcombine.low %v465_v56, %v473_v1  ;;  %v489_v4 = vcombine.high %v465_v56, %v473_v1 }
 0x2fe   :  { %v496_v15 = vrot.slane %v488_v3, %v3536_v5  ;;  %v503_v16 = vrot.slane %v489_v4, %v3536_v5 }
 0x2ff   :  { %v477_v8 = vpop.permute.xlu1 %476  ;;  %v173_v9 = vpop.permute.xlu0 %172 }
 0x300   :  { %v504_v10 = vcombine.low %v469_v0, %v477_v8  ;;  %v505_v11 = vcombine.high %v469_v0, %v477_v8  ;;  %v194_v12 = vcombine.low %v161_v59, %v173_v9  ;;  %v195_v13 = vcombine.high %v161_v59, %v173_v9 }
 0x302   :  { %v512_v17 = vrot.slane %v504_v10, %v3536_v5  ;;  %v519_v18 = vrot.slane %v505_v11, %v3536_v5  ;;  %v202_v19 = vrot.slane %v194_v12, %v3536_v5  ;;  %v209_v20 = vrot.slane %v195_v13, %v3536_v5 }
 0x303   :  { %v467_v23 = vpop.permute.xlu1 %466  ;;  %v471_v24 = vpop.permute.xlu0 %470 }
 0x304   :  { %v520_v25 = vcombine.low %v496_v15, %v512_v17  ;;  %v521_v27 = vcombine.high %v496_v15, %v512_v17  ;;  %v536_v28 = vcombine.low %v503_v16, %v519_v18  ;;  %v537_v29 = vcombine.high %v503_v16, %v519_v18 }
 0x305   :  { %v210_v30 = vcombine.low %v186_v21, %v202_v19  ;;  %v211_v31 = vcombine.high %v186_v21, %v202_v19  ;;  %v226_v32 = vcombine.low %v193_v22, %v209_v20  ;;  %v227_v33 = vcombine.high %v193_v22, %v209_v20 }
 0x306   :  { %v528_v34 = vrot.slane %v520_v25, %v3539_v14  ;;  %v535_v35 = vrot.slane %v521_v27, %v3539_v14  ;;  %v544_v36 = vrot.slane %v536_v28, %v3539_v14  ;;  %v551_v37 = vrot.slane %v537_v29, %v3539_v14 }
 0x307   :  { %v218_v38 = vrot.slane %v210_v30, %v3539_v14  ;;  %v225_v39 = vrot.slane %v211_v31, %v3539_v14  ;;  %v234_v40 = vrot.slane %v226_v32, %v3539_v14  ;;  %v241_v41 = vrot.slane %v227_v33, %v3539_v14  ;;  %v475_v42 = vpop.permute.xlu1 %474  ;;  %v479_v43 = vpop.permute.xlu0 %478 }
 0x308   :  { %v624_v44 = vcombine.low %v528_v34, %v535_v35  ;;  %v2996_v47 = vcombine.high %v528_v34, %v535_v35  ;;  %v640_v56 = vcombine.low %v544_v36, %v551_v37  ;;  %v2997_v57 = vcombine.high %v544_v36, %v551_v37 }
 0x309   :  { %v314_v58 = vcombine.low %v218_v38, %v225_v39  ;;  %v2992_v59 = vcombine.high %v218_v38, %v225_v39  ;;  %v330_v60 = vcombine.low %v234_v40, %v241_v41  ;;  %v2993_v61 = vcombine.high %v234_v40, %v241_v41 }
 0x30a   :  { %v3558_v62 = vrot.slane %v624_v44, %v3536_v5  ;;  %v3561_v63 = vrot.slane %v2996_v47, %v3536_v5  ;;  %v3564_v0 = vrot.slane %v640_v56, %v3536_v5  ;;  %v3567_v1 = vrot.slane %v2997_v57, %v3536_v5 }
 0x30b   :  { %v3570_v2 = vrot.slane %v314_v58, %v3536_v5  ;;  %v3573_v3 = vrot.slane %v2992_v59, %v3536_v5  ;;  %v3576_v4 = vrot.slane %v330_v60, %v3536_v5  ;;  %v3579_v6 = vrot.slane %v2993_v61, %v3536_v5  ;;  %v163_v7 = vpop.permute.xlu1 %162  ;;  %v169_v8 = vpop.permute.xlu0 %168 }
 0x30c   :  { %v656_v9 = vcombine.low %v3558_v62, %v3561_v63  ;;  %v672_v10 = vcombine.low %v3564_v0, %v3567_v1  ;;  %v556_v11 = vcombine.low %v467_v23, %v475_v42  ;;  %v557_v12 = vcombine.high %v467_v23, %v475_v42 }
 0x30d   :  { %v346_v13 = vcombine.low %v3570_v2, %v3573_v3  ;;  %v362_v15 = vcombine.low %v3576_v4, %v3579_v6  ;;  %v572_v16 = vcombine.low %v471_v24, %v479_v43  ;;  %v573_v17 = vcombine.high %v471_v24, %v479_v43 }
 0x30e   :  { %v564_v18 = vrot.slane %v556_v11, %v3536_v5  ;;  %v571_v19 = vrot.slane %v557_v12, %v3536_v5  ;;  %v246_v20 = vcombine.low %v3523_v55, %v169_v8  ;;  %v247_v21 = vcombine.high %v3523_v55, %v169_v8 }
 0x30f   :  { %v580_v22 = vrot.slane %v572_v16, %v3536_v5  ;;  %v587_v23 = vrot.slane %v573_v17, %v3536_v5  ;;  %v175_v25 = vpop.permute.xlu1 %174  ;;  %v3596_v27 = vrot.slane %v656_v9, %v3539_v14  ;;  %v3599_v28 = vrot.slane %v672_v10, %v3539_v14 }
 0x310   :  { %v254_v24 = vrot.slane %v246_v20, %v3536_v5  ;;  %v261_v29 = vrot.slane %v247_v21, %v3536_v5  ;;  %v262_v30 = vcombine.low %v163_v7, %v175_v25  ;;  %v263_v31 = vcombine.high %v163_v7, %v175_v25 }
 0x311   :  { %v588_v32 = vcombine.low %v564_v18, %v580_v22  ;;  %v589_v33 = vcombine.high %v564_v18, %v580_v22  ;;  %v604_v55 = vcombine.low %v571_v19, %v587_v23  ;;  %v605_v34 = vcombine.high %v571_v19, %v587_v23 }
 0x312   :  { %v270_v35 = vrot.slane %v262_v30, %v3536_v5  ;;  %v277_v36 = vrot.slane %v263_v31, %v3536_v5  ;;  %v688_v37 = vcombine.low %v3596_v27, %v3599_v28  ;;  %v657_v38 = vcombine.high %v3558_v62, %v3561_v63 }
 0x313   :  { %v596_v39 = vrot.slane %v588_v32, %v3539_v14  ;;  %v603_v40 = vrot.slane %v589_v33, %v3539_v14  ;;  %v612_v41 = vrot.slane %v604_v55, %v3539_v14  ;;  %v619_v42 = vrot.slane %v605_v34, %v3539_v14 }
 0x314   :  { %v278_v43 = vcombine.low %v254_v24, %v270_v35  ;;  %v279_v44 = vcombine.high %v254_v24, %v270_v35  ;;  %v294_v47 = vcombine.low %v261_v29, %v277_v36  ;;  %v295_v56 = vcombine.high %v261_v29, %v277_v36  ;;  %3118 = vmatpush3.xpose.msk.msra.mxu1 %vm1056_vm2, %v688_v37 }
 0x315   :  { %v692_v57 = vcombine.low %v596_v39, %v603_v40  ;;  %v2998_v58 = vcombine.high %v596_v39, %v603_v40  ;;  %v708_v59 = vcombine.low %v612_v41, %v619_v42  ;;  %v2999_v60 = vcombine.high %v612_v41, %v619_v42  ;;  %3122 = vmatprep.subr.mxu1 %v3403_v54 }
 0x316   :  { %v286_v61 = vrot.slane %v278_v43, %v3539_v14  ;;  %v293_v62 = vrot.slane %v279_v44, %v3539_v14  ;;  %v302_v63 = vrot.slane %v294_v47, %v3539_v14  ;;  %v309_v7 = vrot.slane %v295_v56, %v3539_v14 }
 0x317   :  { %v699_v8 = vrot.slane %v692_v57, %v3536_v5  ;;  %v707_v9 = vrot.slane %v2998_v58, %v3536_v5  ;;  %v715_v10 = vrot.slane %v708_v59, %v3536_v5  ;;  %v723_v11 = vrot.slane %v2999_v60, %v3536_v5 }
 0x318   :  { %v382_v12 = vcombine.low %v286_v61, %v293_v62  ;;  %v2994_v16 = vcombine.high %v286_v61, %v293_v62  ;;  %v398_v17 = vcombine.low %v302_v63, %v309_v7  ;;  %v2995_v18 = vcombine.high %v302_v63, %v309_v7 }
 0x319   :  { %v724_v19 = vcombine.low %v699_v8, %v707_v9  ;;  %v740_v20 = vcombine.low %v715_v10, %v723_v11  ;;  %v671_v24 = vrot.slane %v657_v38, %v3539_v14  ;;  %v673_v29 = vcombine.high %v3564_v0, %v3567_v1 }
 0x31a   :  { %v389_v21 = vrot.slane %v382_v12, %v3536_v5  ;;  %v397_v22 = vrot.slane %v2994_v16, %v3536_v5  ;;  %v405_v23 = vrot.slane %v398_v17, %v3536_v5  ;;  %v413_v25 = vrot.slane %v2995_v18, %v3536_v5 }
 0x31b   :  { %v354_v30 = vrot.slane %v346_v13, %v3539_v14  ;;  %v370_v31 = vrot.slane %v362_v15, %v3539_v14  ;;  %v687_v55 = vrot.slane %v673_v29, %v3539_v14  ;;  %v347_v35 = vcombine.high %v3570_v2, %v3573_v3 }
 0x31c   :  { %v414_v32 = vcombine.low %v389_v21, %v397_v22  ;;  %v430_v33 = vcombine.low %v405_v23, %v413_v25  ;;  %v363_v36 = vcombine.high %v3576_v4, %v3579_v6  ;;  %v689_v37 = vcombine.high %v3596_v27, %v3599_v28 }
 0x31d   :  { %v378_v34 = vcombine.low %v354_v30, %v370_v31  ;;  %v732_v0 = vrot.slane %v724_v19, %v3539_v14  ;;  %v748_v1 = vrot.slane %v740_v20, %v3539_v14  ;;  %v690_v13 = vcombine.low %v671_v24, %v687_v55 }
 0x31e   :  { %v361_v15 = vrot.slane %v347_v35, %v3539_v14  ;;  %v377_v38 = vrot.slane %v363_v36, %v3539_v14  ;;  %v725_v39 = vcombine.high %v699_v8, %v707_v9  ;;  %v741_v40 = vcombine.high %v715_v10, %v723_v11 }
 0x31f   :  { %3120 = vmatmul.mubr.msk.f32.vlgmr.msra.gmra.mrb[2].mxu1 %vm1056_vm2, %v378_v34  ;;  %v379_v2 = vcombine.high %v354_v30, %v370_v31  ;;  %3128 = vmatpush3.xpose.msk.msra.mxu0 %vm1056_vm2, %v690_v13  ;;  %v756_v3 = vcombine.low %v732_v0, %v748_v1  ;;  %v422_v4 = vrot.slane %v414_v32, %v3539_v14 }
 0x320   :  { %3123 = vmatpush3.xpose.msk.msra.mxu1 %vm1056_vm2, %v689_v37  ;;  %3124 = vmatprep.mubr.msk.f32.mxu1 %vm3404_vm1, %v3403_v54  ;;  %v438_v6 = vrot.slane %v430_v33, %v3539_v14  ;;  %v691_v27 = vcombine.high %v671_v24, %v687_v55  ;;  %v380_v28 = vcombine.low %v361_v15, %v377_v38 }
 0x321   :  { %3132 = vmatprep.subr.mxu1 %v3403_v54  ;;  %3137 = vmatprep.subr.mxu0 %v3403_v54  ;;  %v415_v41 = vcombine.high %v389_v21, %v397_v22  ;;  %v431_v42 = vcombine.high %v405_v23, %v413_v25  ;;  %v739_v43 = vrot.slane %v725_v39, %v3539_v14 }
 0x322   :  { %3130 = vmatmul.mubr.msk.f32.vlgmr.msra.gmra.mrb[0].mxu0 %vm1056_vm2, %v380_v28  ;;  %v755_v44 = vrot.slane %v741_v40, %v3539_v14  ;;  %v381_v47 = vcombine.high %v361_v15, %v377_v38  ;;  %v446_v56 = vcombine.low %v422_v4, %v438_v6  ;;  %v757_v57 = vcombine.high %v732_v0, %v748_v1 }
 0x323   :  { %3125 = vmatmul.mubr.msk.f32.vlgmr.msra.gmra.mrb[4].mxu1 %vm1056_vm2, %v379_v2  ;;  %3138 = vmatpush3.xpose.msk.msra.mxu0 %vm1056_vm2, %v756_v3  ;;  %v447_v58 = vcombine.high %v422_v4, %v438_v6  ;;  %v429_v59 = vrot.slane %v415_v41, %v3539_v14  ;;  %v445_v60 = vrot.slane %v431_v42, %v3539_v14 }
 0x324   :  { %3133 = vmatpush3.xpose.msk.msra.mxu1 %vm1056_vm2, %v691_v27  ;;  %3134 = vmatprep.mubr.msk.f32.mxu1 %vm3404_vm1, %v3403_v54  ;;  %v758_v61 = vcombine.low %v739_v43, %v755_v44  ;;  %v759_v62 = vcombine.high %v739_v43, %v755_v44 }
 0x325   :  { %3142 = vmatprep.subr.mxu1 %v3403_v54  ;;  %3139 = vmatprep.mubr.msk.f32.mxu0 %vm3404_vm1, %v3403_v54  ;;  %v448_v63 = vcombine.low %v429_v59, %v445_v60  ;;  %v449_v7 = vcombine.high %v429_v59, %v445_v60 }
 0x326   :  { %3147 = vmatprep.subr.mxu0 %v3403_v54  ;;  %3140 = vmatmul.mubr.msk.f32.vlgmr.msra.gmra.mrb[2].mxu0 %vm1056_vm2, %v446_v56 }
 0x327   :  { %3135 = vmatmul.mubr.msk.f32.vlgmr.msra.gmra.mrb[6].mxu1 %vm1056_vm2, %v381_v47  ;;  %3148 = vmatpush3.xpose.msk.msra.mxu0 %vm1056_vm2, %v758_v61 }
 0x328   :  { %3143 = vmatpush3.xpose.msk.msra.mxu1 %vm1056_vm2, %v757_v57  ;;  %3144 = vmatprep.mubr.msk.f32.mxu1 %vm3404_vm1, %v3403_v54 }
 0x329   :  { %3152 = vmatprep.subr.mxu1 %v3403_v54  ;;  %3149 = vmatprep.mubr.msk.f32.mxu0 %vm3404_vm1, %v3403_v54 }
 0x32a   :  { %3157 = vmatprep.subr.mxu0 %v3403_v54  ;;  %3150 = vmatmul.mubr.msk.f32.vlgmr.msra.gmra.mrb[4].mxu0 %vm1056_vm2, %v448_v63 }
 0x32b   :  { %3145 = vmatmul.mubr.msk.f32.vlgmr.msra.gmra.mrb[8].mxu1 %vm1056_vm2, %v447_v58  ;;  %3159 = vmatprep.mubr.msk.f32.mxu0 %vm3404_vm1, %v3403_v54 }
 0x32c   :  { %3153 = vmatpush3.xpose.msk.msra.mxu1 %vm1056_vm2, %v759_v62  ;;  %3154 = vmatprep.mubr.msk.f32.mxu1 %vm3404_vm1, %v3403_v54 }
 0x32d   :  { %3162 = vmatprep.subr.mxu1 %v3403_v54 }
 0x32f   :  { %3155 = vmatmul.mubr.msk.f32.vlgmr.msra.gmra.mrb[10].mxu1 %vm1056_vm2, %v449_v7 }
 0x330   :  { %3164 = vmatprep.mubr.msk.f32.mxu1 %vm3404_vm1, %v3403_v54 }
 0x3f2   :  { %v1129_v8 = vpop.f32.mrb[2].mxu1 }
 0x3f3   :  { %v3121_v9 = vpop.f32.mrb[3].mxu1  ;;  %v1665_v10 = vsel %vm1056_vm2, %v1129_v8, -inf }
 0x3f4   :  { %1666 = vmax.xlane.f32.xlu0 %v1665_v10 }
 0x3f5   :  { %v1281_v12 = vpop.f32.mrb[0].mxu0 }
 0x3f6   :  { %v1205_v11 = vpop.f32.mrb[4].mxu1  ;;  %v3131_v18 = vpop.f32.mrb[1].mxu0  ;;  %v1671_v19 = vsel %vm1056_vm2, %v1281_v12, -inf }
 0x3f7   :  { %v3126_v16 = vpop.f32.mrb[5].mxu1  ;;  %v1668_v17 = vsel %vm1056_vm2, %v1205_v11, -inf }
 0x3f8   :  { %1669 = vmax.xlane.f32.xlu1 %v1668_v17  ;;  %1672 = vmax.xlane.f32.xlu0 %v1671_v19 }
 0x3f9   :  { %v1433_v22 = vpop.f32.mrb[2].mxu0 }
 0x3fa   :  { %v1357_v20 = vpop.f32.mrb[6].mxu1  ;;  %v3141_v23 = vpop.f32.mrb[3].mxu0  ;;  %v1677_v25 = vsel %vm1056_vm2, %v1433_v22, -inf }
 0x3fb   :  { %v3136_v21 = vpop.f32.mrb[7].mxu1  ;;  %v1674_v32 = vsel %vm1056_vm2, %v1357_v20, -inf }
 0x3fc   :  { %1678 = vmax.xlane.f32.xlu0 %v1677_v25 }
 0x3fd   :  { %v1585_v30 = vpop.f32.mrb[4].mxu0 }
 0x3fe   :  { %v3691_v24 = vpop.f32.mrb[8].mxu1  ;;  %v3151_v31 = vpop.f32.mrb[5].mxu0  ;;  %v1683_v34 = vsel %vm1056_vm2, %v1585_v30, -inf }
 0x3ff   :  { %v3146_v29 = vpop.f32.mrb[9].mxu1  ;;  %v1680_v35 = vsel %vm1056_vm2, %v3691_v24, -inf }
 0x400   :  { %1675 = vmax.xlane.f32.xlu0 %v1674_v32 }
 0x402   :  { %v3694_v33 = vpop.f32.mrb[10].mxu1 }
 0x403   :  { %v3156_v55 = vpop.f32.mrb[11].mxu1  ;;  %v1686_v36 = vsel %vm1056_vm2, %v3694_v33, -inf }
 0x404   :  { %1684 = vmax.xlane.f32.xlu0 %v1683_v34 }
 0x409   :  { %764 = vrot.lane.b32.xlu1 %v3502_v49, %s3407_s14 }
 0x40d   :  { %768 = vrot.lane.b32.xlu1 %v3500_v48, %s3407_s14 }
 0x41a   :  { %760 = vrot.lane.b32.xlu0 %v3480_v45, %s3407_s14 }
 0x431   :  { %1681 = vmax.xlane.f32.xlu1 %v1680_v35 }
 0x435   :  { %1687 = vmax.xlane.f32.xlu1 %v1686_v36 }
 0x446   :  { %772 = vrot.lane.b32.xlu1 %v3506_v50, %s3407_s14 }
 0x481   :  { %v1667_v37 = vpop.xlane.xlu0 %1666 }
 0x482   :  { %v1689_v0 = vsub.f32 %v1129_v8, %v1667_v37 }
 0x484   :  { %v1697_v49 = vmul.f32 1.442695, %v1689_v0 }
 0x485   :  { %v1670_v1 = vpop.xlane.xlu1 %1669  ;;  %v1673_v13 = vpop.xlane.xlu0 %1672 }
 0x486   :  { %3328 = vpow2.f32 %v1697_v49  ;;  %v1690_v48 = vsub.f32 %v1205_v11, %v1670_v1  ;;  %v1691_v15 = vsub.f32 %v1281_v12, %v1673_v13 }
 0x488   :  { %v1699_v45 = vmul.f32 1.442695, %v1690_v48  ;;  %v1701_v38 = vmul.f32 1.442695, %v1691_v15 }
 0x489   :  { %v1679_v39 = vpop.xlane.xlu0 %1678  ;;  %v765_v63 = vpop.permute.xlu1 %764 }
 0x48a   :  { %3330 = vpow2.f32 %v1699_v45  ;;  %v1693_v40 = vsub.f32 %v1433_v22, %v1679_v39 }
 0x48b   :  { %3332 = vpow2.f32 %v1701_v38 }
 0x48c   :  { %v1705_v2 = vmul.f32 1.442695, %v1693_v40 }
 0x48d   :  { %v1676_v3 = vpop.xlane.xlu0 %1675  ;;  %v769_v7 = vpop.permute.xlu1 %768 }
 0x48e   :  { %3334 = vpow2.f32 %v1705_v2  ;;  %v1692_v50 = vsub.f32 %v1357_v20, %v1676_v3 }
 0x490   :  { %v3709_v4 = vpop.eup %3328  ;;  %v1703_v27 = vmul.f32 1.442695, %v1692_v50 }
 0x491   :  { %v1713_v6 = vsel %vm1056_vm2, %v3709_v4, 0.0  ;;  %v1685_v28 = vpop.xlane.xlu0 %1684 }
 0x492   :  { %1714 = vadd.xlane.f32.xlu0 %v1713_v6  ;;  %3336 = vpow2.f32 %v1703_v27  ;;  %v1695_v42 = vsub.f32 %v1585_v30, %v1685_v28 }
 0x494   :  { %v3713_v41 = vpop.eup %3330  ;;  %v1709_v56 = vmul.f32 1.442695, %v1695_v42 }
 0x495   :  { %v3715_v43 = vpop.eup %3332  ;;  %v1716_v44 = vsel %vm1056_vm2, %v3713_v41, 0.0  ;;  %v761_v11 = vpop.permute.xlu0 %760 }
 0x496   :  { %1717 = vadd.xlane.f32.xlu1 %v1716_v44  ;;  %v1719_v47 = vsel %vm1056_vm2, %v3715_v43, 0.0  ;;  %3338 = vpow2.f32 %v1709_v56  ;;  %v784_v17 = vcombine.low %v761_v11, %v769_v7  ;;  %v785_v18 = vcombine.high %v761_v11, %v769_v7 }
 0x497   :  { %1720 = vadd.xlane.f32.xlu0 %v1719_v47 }
 0x498   :  { %v3721_v57 = vpop.eup %3334  ;;  %v792_v23 = vrot.slane %v784_v17, %v3536_v5  ;;  %v799_v25 = vrot.slane %v785_v18, %v3536_v5 }
 0x499   :  { %v1725_v58 = vsel %vm1056_vm2, %v3721_v57, 0.0 }
 0x49b   :  { %1726 = vadd.xlane.f32.xlu0 %v1725_v58 }
 0x49c   :  { %v3725_v59 = vpop.eup %3336 }
 0x49d   :  { %v1722_v60 = vsel %vm1056_vm2, %v3725_v59, 0.0 }
 0x49e   :  { %1723 = vadd.xlane.f32.xlu1 %v1722_v60 }
 0x4a0   :  { %v3729_v61 = vpop.eup %3338 }
 0x4a1   :  { %v1731_v62 = vsel %vm1056_vm2, %v3729_v61, 0.0 }
 0x4a2   :  { %1732 = vadd.xlane.f32.xlu0 %v1731_v62 }
 0x4be   :  { %v1682_v8 = vpop.xlane.xlu1 %1681 }
 0x4bf   :  { %v1694_v9 = vsub.f32 %v3691_v24, %v1682_v8 }
 0x4c1   :  { %v1707_v10 = vmul.f32 1.442695, %v1694_v9 }
 0x4c2   :  { %v1688_v12 = vpop.xlane.xlu1 %1687 }
 0x4c3   :  { %3340 = vpow2.f32 %v1707_v10  ;;  %v1696_v16 = vsub.f32 %v3694_v33, %v1688_v12 }
 0x4c5   :  { %v1711_v19 = vmul.f32 1.442695, %v1696_v16 }
 0x4c6   :  { %v773_v20 = vpop.permute.xlu1 %772 }
 0x4c7   :  { %3342 = vpow2.f32 %v1711_v19  ;;  %v800_v21 = vcombine.low %v765_v63, %v773_v20  ;;  %v801_v22 = vcombine.high %v765_v63, %v773_v20 }
 0x4c9   :  { %v808_v29 = vrot.slane %v800_v21, %v3536_v5  ;;  %v815_v24 = vrot.slane %v801_v22, %v3536_v5 }
 0x4cb   :  { %v816_v30 = vcombine.low %v792_v23, %v808_v29  ;;  %v817_v31 = vcombine.high %v792_v23, %v808_v29  ;;  %v832_v32 = vcombine.low %v799_v25, %v815_v24  ;;  %v833_v55 = vcombine.high %v799_v25, %v815_v24 }
 0x4cd   :  { %v3739_v33 = vpop.eup %3340  ;;  %v824_v34 = vrot.slane %v816_v30, %v3539_v14  ;;  %v831_v35 = vrot.slane %v817_v31, %v3539_v14  ;;  %v840_v36 = vrot.slane %v832_v32, %v3539_v14  ;;  %v847_v37 = vrot.slane %v833_v55, %v3539_v14 }
 0x4ce   :  { %v1728_v0 = vsel %vm1056_vm2, %v3739_v33, 0.0 }
 0x4cf   :  { %v920_v49 = vcombine.low %v824_v34, %v831_v35  ;;  %v3000_v1 = vcombine.high %v824_v34, %v831_v35  ;;  %v936_v48 = vcombine.low %v840_v36, %v847_v37  ;;  %v3001_v13 = vcombine.high %v840_v36, %v847_v37  ;;  %1729 = vadd.xlane.f32.xlu1 %v1728_v0 }
 0x4d1   :  { %v3747_v15 = vpop.eup %3342  ;;  %v927_v45 = vrot.slane %v920_v49, %v3536_v5  ;;  %v935_v38 = vrot.slane %v3000_v1, %v3536_v5  ;;  %v943_v39 = vrot.slane %v936_v48, %v3536_v5  ;;  %v951_v40 = vrot.slane %v3001_v13, %v3536_v5 }
 0x4d2   :  { %v1734_v2 = vsel %vm1056_vm2, %v3747_v15, 0.0 }
 0x4d3   :  { %1735 = vadd.xlane.f32.xlu0 %v1734_v2  ;;  %v952_v3 = vcombine.low %v927_v45, %v935_v38  ;;  %v968_v50 = vcombine.low %v943_v39, %v951_v40  ;;  %v953_v6 = vcombine.high %v927_v45, %v935_v38  ;;  %v969_v27 = vcombine.high %v943_v39, %v951_v40 }
 0x4d5   :  { %v960_v28 = vrot.slane %v952_v3, %v3539_v14  ;;  %v976_v42 = vrot.slane %v968_v50, %v3539_v14  ;;  %v967_v44 = vrot.slane %v953_v6, %v3539_v14  ;;  %v983_v47 = vrot.slane %v969_v27, %v3539_v14 }
 0x4d7   :  { %v984_v56 = vcombine.low %v960_v28, %v976_v42  ;;  %v985_v58 = vcombine.high %v960_v28, %v976_v42  ;;  %v986_v60 = vcombine.low %v967_v44, %v983_v47  ;;  %v987_v62 = vcombine.high %v967_v44, %v983_v47 }
 0x4d9   :  { %3158 = vmatpush3.msra.mxu0 %v984_v56  ;;  %3163 = vmatpush3.msra.mxu1 %v985_v58 }
 0x4da   :  { %3167 = vmatprep.subr.mxu0 %v3403_v54  ;;  %3172 = vmatprep.subr.mxu1 %v3403_v54 }
 0x4e0   :  { %766 = vrot.lane.b32.xlu1 %v3510_v51, %s3407_s14 }
 0x4e4   :  { %770 = vrot.lane.b32.xlu1 %v3514_v52, %s3407_s14 }
 0x4e8   :  { %774 = vrot.lane.b32.xlu1 %v3516_v53, %s3407_s14 }
 0x4e9   :  { %762 = vrot.lane.b32.xlu0 %v3486_v46, %s3407_s14 }
 0x51f   :  { %v1715_v63 = vpop.xlane.xlu0 %1714 }
 0x520   :  { %3344 = vrcp.f32 %v1715_v63 }
 0x523   :  { %v1718_v7 = vpop.xlane.xlu1 %1717 }
 0x524   :  { %3346 = vrcp.f32 %v1718_v7  ;;  %v1721_v8 = vpop.xlane.xlu0 %1720 }
 0x525   :  { %3348 = vrcp.f32 %v1721_v8 }
 0x52a   :  { %v3345_v9 = vpop.eup %3344 }
 0x52b   :  { %v1745_v10 = vmul.f32 %v3345_v9, %v3709_v4  ;;  %v1724_v51 = vpop.xlane.xlu1 %1723 }
 0x52c   :  { %3350 = vrcp.f32 %v1724_v51 }
 0x52d   :  { %3160 = vmatmul.mubr.msk.f32.vlgmr.msra.gmra.mrb[6].mxu0 %vm1056_vm2, %v1745_v10 }
 0x52e   :  { %v3347_v11 = vpop.eup %3346  ;;  %3168 = vmatpush3.msra.mxu0 %v986_v60  ;;  %3169 = vmatprep.mubr.msk.f32.mxu0 %vm3404_vm1, %v3403_v54 }
 0x52f   :  { %v3349_v52 = vpop.eup %3348  ;;  %v1746_v46 = vmul.f32 %v3347_v11, %v3713_v41  ;;  %3177 = vmatprep.subr.mxu0 %v3403_v54 }
 0x530   :  { %v1747_v53 = vmul.f32 %v3349_v52, %v3715_v43  ;;  %v1727_v43 = vpop.xlane.xlu0 %1726 }
 0x531   :  { %3165 = vmatmul.mubr.msk.f32.vlgmr.msra.gmra.mrb[12].mxu1 %vm1056_vm2, %v1746_v46  ;;  %3352 = vrcp.f32 %v1727_v43 }
 0x532   :  { %3170 = vmatmul.mubr.msk.f32.vlgmr.msra.gmra.mrb[8].mxu0 %vm1056_vm2, %v1747_v53  ;;  %3173 = vmatpush3.msra.mxu1 %v987_v62 }
 0x533   :  { %3174 = vmatprep.mubr.msk.f32.mxu1 %vm3404_vm1, %v3403_v54  ;;  %3182 = vmatprep.subr.mxu1 %v3403_v54 }
 0x534   :  { %3179 = vmatprep.mubr.msk.f32.mxu0 %vm3404_vm1, %v3403_v54  ;;  %v1733_v12 = vpop.xlane.xlu0 %1732 }
 0x536   :  { %v3351_v4 = vpop.eup %3350 }
 0x537   :  { %v1748_v41 = vmul.f32 %v3351_v4, %v3725_v59 }
 0x539   :  { %3175 = vmatmul.mubr.msk.f32.vlgmr.msra.gmra.mrb[14].mxu1 %vm1056_vm2, %v1748_v41 }
 0x53a   :  { %3184 = vmatprep.mubr.msk.f32.mxu1 %vm3404_vm1, %v3403_v54 }
 0x53b   :  { %v3353_v3 = vpop.eup %3352 }
 0x53c   :  { %v1749_v8 = vmul.f32 %v3353_v3, %v3721_v57 }
 0x55c   :  { %v1730_v16 = vpop.xlane.xlu1 %1729 }
 0x55d   :  { %3354 = vrcp.f32 %v1730_v16 }
 0x55e   :  { %3356 = vrcp.f32 %v1733_v12 }
 0x560   :  { %v767_v17 = vpop.permute.xlu1 %766  ;;  %v1736_v18 = vpop.xlane.xlu0 %1735 }
 0x561   :  { %3358 = vrcp.f32 %v1736_v18 }
 0x564   :  { %v771_v19 = vpop.permute.xlu1 %770  ;;  %v763_v20 = vpop.permute.xlu0 %762 }
 0x565   :  { %v852_v21 = vcombine.low %v763_v20, %v771_v19  ;;  %v853_v22 = vcombine.high %v763_v20, %v771_v19 }
 0x567   :  { %v860_v59 = vrot.slane %v852_v21, %v3536_v5  ;;  %v867_v24 = vrot.slane %v853_v22, %v3536_v5  ;;  %v3355_v42 = vpop.eup %3354 }
 0x568   :  { %v775_v23 = vpop.permute.xlu1 %774  ;;  %v3357_v56 = vpop.eup %3356  ;;  %v1750_v9 = vmul.f32 %v3355_v42, %v3739_v33 }
 0x569   :  { %v868_v25 = vcombine.low %v767_v17, %v775_v23  ;;  %v869_v29 = vcombine.high %v767_v17, %v775_v23  ;;  %v1751_v11 = vmul.f32 %v3357_v56, %v3729_v61 }
 0x56b   :  { %v876_v30 = vrot.slane %v868_v25, %v3536_v5  ;;  %v883_v31 = vrot.slane %v869_v29, %v3536_v5  ;;  %v3359_v7 = vpop.eup %3358 }
 0x56c   :  { %v1752_v52 = vmul.f32 %v3359_v7, %v3747_v15 }
 0x56d   :  { %v884_v32 = vcombine.low %v860_v59, %v876_v30  ;;  %v885_v55 = vcombine.high %v860_v59, %v876_v30  ;;  %v900_v34 = vcombine.low %v867_v24, %v883_v31  ;;  %v901_v35 = vcombine.high %v867_v24, %v883_v31 }
 0x56f   :  { %v892_v36 = vrot.slane %v884_v32, %v3539_v14  ;;  %v899_v37 = vrot.slane %v885_v55, %v3539_v14  ;;  %v908_v0 = vrot.slane %v900_v34, %v3539_v14  ;;  %v915_v49 = vrot.slane %v901_v35, %v3539_v14 }
 0x571   :  { %v988_v1 = vcombine.low %v892_v36, %v899_v37  ;;  %v3002_v48 = vcombine.high %v892_v36, %v899_v37  ;;  %v1004_v13 = vcombine.low %v908_v0, %v915_v49  ;;  %v3003_v45 = vcombine.high %v908_v0, %v915_v49 }
 0x573   :  { %v995_v38 = vrot.slane %v988_v1, %v3536_v5  ;;  %v1003_v39 = vrot.slane %v3002_v48, %v3536_v5  ;;  %v1011_v40 = vrot.slane %v1004_v13, %v3536_v5  ;;  %v1019_v2 = vrot.slane %v3003_v45, %v3536_v5 }
 0x575   :  { %v1020_v50 = vcombine.low %v995_v38, %v1003_v39  ;;  %v1036_v6 = vcombine.low %v1011_v40, %v1019_v2  ;;  %v1021_v27 = vcombine.high %v995_v38, %v1003_v39  ;;  %v1037_v28 = vcombine.high %v1011_v40, %v1019_v2 }
 0x577   :  { %v1028_v44 = vrot.slane %v1020_v50, %v3539_v14  ;;  %v1044_v47 = vrot.slane %v1036_v6, %v3539_v14  ;;  %v1035_v58 = vrot.slane %v1021_v27, %v3539_v14  ;;  %v1051_v60 = vrot.slane %v1037_v28, %v3539_v14 }
 0x579   :  { %v1052_v62 = vcombine.low %v1028_v44, %v1044_v47  ;;  %v1053_v63 = vcombine.high %v1028_v44, %v1044_v47  ;;  %v1054_v10 = vcombine.low %v1035_v58, %v1051_v60  ;;  %v1055_v51 = vcombine.high %v1035_v58, %v1051_v60 }
 0x57b   :  { %3178 = vmatpush3.msra.mxu0 %v1052_v62  ;;  %3183 = vmatpush3.msra.mxu1 %v1053_v63 }
 0x57c   :  { %3180 = vmatmul.mubr.msk.f32.vlgmr.msra.gmra.mrb[10].mxu0 %vm1056_vm2, %v1749_v8  ;;  %3185 = vmatmul.mubr.msk.f32.vlgmr.msra.gmra.mrb[16].mxu1 %vm1056_vm2, %v1750_v9 }
 0x57d   :  { %3187 = vmatprep.subr.mxu0 %v3403_v54  ;;  %3192 = vmatprep.subr.mxu1 %v3403_v54 }
 0x57e   :  { %3188 = vmatpush3.msra.mxu0 %v1054_v10  ;;  %3193 = vmatpush3.msra.mxu1 %v1055_v51 }
 0x57f   :  { %3189 = vmatprep.mubr.msk.f32.mxu0 %vm3404_vm1, %v3403_v54  ;;  %3194 = vmatprep.mubr.msk.f32.mxu1 %vm3404_vm1, %v3403_v54 }
 0x580   :  { %3190 = vmatmul.mubr.msk.f32.vlgmr.msra.gmra.mrb[12].mxu0 %vm1056_vm2, %v1751_v11  ;;  %3195 = vmatmul.mubr.msk.f32.vlgmr.msra.gmra.mrb[18].mxu1 %vm1056_vm2, %v1752_v52 }
 0x600   :  { %v1822_v57 = vpop.f32.mrb[6].mxu0 }
 0x601   :  { %v3161_v33 = vpop.f32.mrb[7].mxu0 }
 0x604   :  { %v1895_v46 = vpop.f32.mrb[12].mxu1 }
 0x605   :  { %v1968_v53 = vpop.f32.mrb[8].mxu0  ;;  %v3166_v4 = vpop.f32.mrb[13].mxu1 }
 0x606   :  { %v2337_v61 = vcombine.low %v1822_v57, %v1968_v53  ;;  %v2338_v41 = vcombine.high %v1822_v57, %v1968_v53  ;;  %v3171_v15 = vpop.f32.mrb[9].mxu0  ;;  %v2641_v53 = vld [vmem:[%s3997_s3] sm:$0xff]  ;;  %v2642_v4 = vld [vmem:[%s3997_s3 + $0x8] sm:$0xff] }
 0x608   :  { %v2345_v18 = vrot.slane %v2337_v61, %v3536_v5  ;;  %v2352_v54 = vrot.slane %v2338_v41, %v3536_v5 }
 0x60c   :  { %v2041_v43 = vpop.f32.mrb[14].mxu1 }
 0x60d   :  { %v2353_v12 = vcombine.low %v1895_v46, %v2041_v43  ;;  %v2354_v16 = vcombine.high %v1895_v46, %v2041_v43  ;;  %v3176_v17 = vpop.f32.mrb[15].mxu1 }
 0x60f   :  { %v2361_v19 = vrot.slane %v2353_v12, %v3536_v5  ;;  %v2368_v20 = vrot.slane %v2354_v16, %v3536_v5  ;;  %v3262_v12 = vpack.c.bf16 %v2642_v4, %v2641_v53 }
 0x611   :  { %v2369_v21 = vcombine.low %v2345_v18, %v2361_v19  ;;  %v2370_v22 = vcombine.high %v2345_v18, %v2361_v19  ;;  %v2385_v23 = vcombine.low %v2352_v54, %v2368_v20  ;;  %v2386_v25 = vcombine.high %v2352_v54, %v2368_v20  ;;  %3263 = vmatprep.subr.bf16.mxu1 %v3262_v12  ;;  %v2643_v19 = vld [vmem:[%s3997_s3 + $0x10] sm:$0xff]  ;;  %v2644_v20 = vld [vmem:[%s3997_s3 + $0x18] sm:$0xff] }
 0x612   :  { %3265 = vmatpush3.bf16.msra.mxu1 %v3262_v12  ;;  %v2773_v12 = vld [vmem:[%s3998_s4 + $0x18] sm:$0xff] }
 0x613   :  { %v2377_v29 = vrot.slane %v2369_v21, %v3539_v14  ;;  %v2384_v59 = vrot.slane %v2370_v22, %v3539_v14  ;;  %v2393_v24 = vrot.slane %v2385_v23, %v3539_v14  ;;  %v2400_v30 = vrot.slane %v2386_v25, %v3539_v14 }
 0x615   :  { %v2473_v31 = vcombine.low %v2377_v29, %v2384_v59  ;;  %v3028_v32 = vcombine.high %v2377_v29, %v2384_v59  ;;  %v2489_v55 = vcombine.low %v2393_v24, %v2400_v30  ;;  %v3029_v34 = vcombine.high %v2393_v24, %v2400_v30 }
 0x616   :  { %v3266_v29 = vpack.c.bf16 %v2644_v20, %v2643_v19 }
 0x617   :  { %v2480_v35 = vrot.slane %v2473_v31, %v3536_v5  ;;  %v2488_v36 = vrot.slane %v3028_v32, %v3536_v5  ;;  %v2496_v37 = vrot.slane %v2489_v55, %v3536_v5  ;;  %v2504_v0 = vrot.slane %v3029_v34, %v3536_v5 }
 0x618   :  { %3267 = vmatprep.subr.bf16.mxu1 %v3266_v29 }
 0x619   :  { %v2505_v49 = vcombine.low %v2480_v35, %v2488_v36  ;;  %v2521_v1 = vcombine.low %v2496_v37, %v2504_v0  ;;  %v2506_v48 = vcombine.high %v2480_v35, %v2488_v36  ;;  %v2522_v13 = vcombine.high %v2496_v37, %v2504_v0  ;;  %3269 = vmatpush3.bf16.msra.mxu1 %v3266_v29 }
 0x61b   :  { %v3830_v45 = vrot.slane %v2505_v49, %v3539_v14  ;;  %v3833_v38 = vrot.slane %v2521_v1, %v3539_v14  ;;  %v2520_v39 = vrot.slane %v2506_v48, %v3539_v14  ;;  %v2536_v40 = vrot.slane %v2522_v13, %v3539_v14 }
 0x61d   :  { %v2538_v2 = vcombine.high %v3830_v45, %v3833_v38  ;;  %v2539_v3 = vcombine.low %v2520_v39, %v2536_v40  ;;  %v2540_v50 = vcombine.high %v2520_v39, %v2536_v40  ;;  %v2537_v6 = vcombine.low %v3830_v45, %v3833_v38  ;;  %v3886_v45 = vld [vmem:[%s3995_s1] sm:$0xff] }
 0x61f   :  { %2611 = vrot.lane.b32.xlu0 %v2538_v2, %s3408_s15 }
 0x623   :  { %2619 = vrot.lane.b32.xlu0 %v2539_v3, %s3409_s16 }
 0x627   :  { %2627 = vrot.lane.b32.xlu0 %v2540_v50, %s3410_s17 }
 0x64f   :  { %v2114_v27 = vpop.f32.mrb[10].mxu0  ;;  %v2187_v28 = vpop.f32.mrb[16].mxu1 }
 0x650   :  { %v3181_v42 = vpop.f32.mrb[11].mxu0  ;;  %v3186_v44 = vpop.f32.mrb[17].mxu1 }
 0x651   :  { %v2647_v42 = vsub.s32 3, %v3470_v26 }
 0x653   :  { %v2260_v47 = vpop.f32.mrb[12].mxu0  ;;  %v2333_v56 = vpop.f32.mrb[18].mxu1  ;;  %v2648_v38 = vrot.slane %v3886_v45, %v2647_v42  ;;  %v2886_v42 = vld [vmem:[%s3999_s5 + $0x58] sm:$0xff] }
 0x654   :  { %v2405_v58 = vcombine.low %v2114_v27, %v2260_v47  ;;  %v2406_v60 = vcombine.high %v2114_v27, %v2260_v47  ;;  %v2421_v62 = vcombine.low %v2187_v28, %v2333_v56  ;;  %v2422_v63 = vcombine.high %v2187_v28, %v2333_v56  ;;  %v3191_v7 = vpop.f32.mrb[13].mxu0  ;;  %v3196_v8 = vpop.f32.mrb[19].mxu1 }
 0x656   :  { %v2413_v9 = vrot.slane %v2405_v58, %v3536_v5  ;;  %v2420_v10 = vrot.slane %v2406_v60, %v3536_v5  ;;  %v2429_v51 = vrot.slane %v2421_v62, %v3536_v5  ;;  %v2436_v11 = vrot.slane %v2422_v63, %v3536_v5  ;;  %v3373_v58 = vld [vmem:[%s3994_s0 + $0x8] sm:$0xff]  ;;  %v3374_v62 = vld [vmem:[%s3994_s0] sm:$0xff] }
 0x658   :  { %v2437_v52 = vcombine.low %v2413_v9, %v2429_v51  ;;  %v2438_v57 = vcombine.high %v2413_v9, %v2429_v51  ;;  %v2453_v33 = vcombine.low %v2420_v10, %v2436_v11  ;;  %v2454_v46 = vcombine.high %v2420_v10, %v2436_v11 }
 0x65a   :  { %v2445_v61 = vrot.slane %v2437_v52, %v3539_v14  ;;  %v2452_v41 = vrot.slane %v2438_v57, %v3539_v14  ;;  %v2461_v15 = vrot.slane %v2453_v33, %v3539_v14  ;;  %v2468_v43 = vrot.slane %v2454_v46, %v3539_v14 }
 0x65c   :  { %v2541_v16 = vcombine.low %v2445_v61, %v2452_v41  ;;  %v3030_v17 = vcombine.high %v2445_v61, %v2452_v41  ;;  %v2557_v18 = vcombine.low %v2461_v15, %v2468_v43  ;;  %v3031_v54 = vcombine.high %v2461_v15, %v2468_v43  ;;  %v2770_v61 = vld [vmem:[%s3998_s4] sm:$0xff]  ;;  %v2771_v41 = vld [vmem:[%s3998_s4 + $0x8] sm:$0xff]  ;;  %v2772_v15 = vld [vmem:[%s3998_s4 + $0x10] sm:$0xff] }
 0x65d   :  { %v3270_v43 = vpack.c.bf16 %v2771_v41, %v2770_v61 }
 0x65e   :  { %v2548_v21 = vrot.slane %v2541_v16, %v3536_v5  ;;  %v2556_v22 = vrot.slane %v3030_v17, %v3536_v5  ;;  %v2564_v23 = vrot.slane %v2557_v18, %v3536_v5  ;;  %v2572_v25 = vrot.slane %v3031_v54, %v3536_v5 }
 0x65f   :  { %v3274_v16 = vpack.c.bf16 %v2773_v12, %v2772_v15  ;;  %3271 = vmatprep.subr.bf16.mxu1 %v3270_v43 }
 0x660   :  { %v2573_v59 = vcombine.low %v2548_v21, %v2556_v22  ;;  %v2589_v24 = vcombine.low %v2564_v23, %v2572_v25  ;;  %v2574_v30 = vcombine.high %v2548_v21, %v2556_v22  ;;  %v2590_v31 = vcombine.high %v2564_v23, %v2572_v25 }
 0x661   :  { %v2760_v22 = vsub.s32 4, %v3470_v26  ;;  %v2766_v23 = vsub.s32 5, %v3470_v26 }
 0x662   :  { %v2581_v32 = vrot.slane %v2573_v59, %v3539_v14  ;;  %v2597_v55 = vrot.slane %v2589_v24, %v3539_v14  ;;  %v2588_v34 = vrot.slane %v2574_v30, %v3539_v14  ;;  %v2604_v35 = vrot.slane %v2590_v31, %v3539_v14 }
 0x663   :  { %v2761_v25 = vrot.slane %v3886_v45, %v2760_v22  ;;  %v2767_v24 = vrot.slane %v3886_v45, %v2766_v23 }
 0x664   :  { %v2606_v36 = vcombine.high %v2581_v32, %v2597_v55  ;;  %v2607_v37 = vcombine.low %v2588_v34, %v2604_v35  ;;  %v2608_v0 = vcombine.high %v2588_v34, %v2604_v35  ;;  %v2605_v5 = vcombine.low %v2581_v32, %v2597_v55 }
 0x666   :  { %2613 = vrot.lane.b32.xlu1 %v2606_v36, %s3408_s15  ;;  %v2875_v36 = vld [vmem:[%s3999_s5] sm:$0xff] }
 0x66a   :  { %2621 = vrot.lane.b32.xlu1 %v2607_v37, %s3409_s16  ;;  %v2876_v37 = vld [vmem:[%s3999_s5 + $0x8] sm:$0xff] }
 0x66e   :  { %2629 = vrot.lane.b32.xlu1 %v2608_v0, %s3410_s17  ;;  %v3278_v0 = vpack.c.bf16 %v2876_v37, %v2875_v36 }
 0x670   :  { %3279 = vmatprep.subr.bf16.mxu0 %v3278_v0 }
 0x671   :  { %3281 = vmatpush3.bf16.msra.mxu0 %v3278_v0 }
 0x691   :  { %v2612_v49 = vpop.permute.xlu0 %2611 }
 0x692   :  { %v2633_v14 = vsel %vm1056_vm2, %v2537_v6, %v2612_v49  ;;  %v2878_v49 = vld [vmem:[%s3999_s5 + $0x18] sm:$0xff] }
 0x695   :  { %v2620_v1 = vpop.permute.xlu0 %2619 }
 0x696   :  { %v2636_v48 = vsel %vm2635_vm3, %v2633_v14, %v2620_v1  ;;  %v2879_v14 = vld [vmem:[%s3999_s5 + $0x20] sm:$0xff] }
 0x699   :  { %v2628_v13 = vpop.permute.xlu0 %2627 }
 0x69a   :  { %v2639_v39 = vsel %vm2638_vm4, %v2636_v48, %v2628_v13  ;;  %v2880_v48 = vld [vmem:[%s3999_s5 + $0x28] sm:$0xff] }
 0x69b   :  { %3205 = vmatprep.mubr.msk.f32.mxu1 %vm27_vm0, %v2639_v39  ;;  %v3286_v13 = vpack.c.bf16 %v2880_v48, %v2879_v14  ;;  %v2881_v39 = vld [vmem:[%s3999_s5 + $0x30] sm:$0xff] }
 0x6d8   :  { %v2614_v40 = vpop.permute.xlu1 %2613 }
 0x6d9   :  { %v2634_v3 = vsel %vm1056_vm2, %v2605_v5, %v2614_v40  ;;  %v2877_v5 = vld [vmem:[%s3999_s5 + $0x10] sm:$0xff]  ;;  %v2882_v40 = vld [vmem:[%s3999_s5 + $0x38] sm:$0xff] }
 0x6da   :  { %v3282_v1 = vpack.c.bf16 %v2878_v49, %v2877_v5 }
 0x6dc   :  { %v2622_v2 = vpop.permute.xlu1 %2621  ;;  %3283 = vmatprep.subr.bf16.mxu0 %v3282_v1 }
 0x6dd   :  { %v2637_v50 = vsel %vm2635_vm3, %v2634_v3, %v2622_v2  ;;  %3285 = vmatpush3.bf16.msra.mxu0 %v3282_v1  ;;  %v3290_v2 = vpack.c.bf16 %v2882_v40, %v2881_v39  ;;  %v2883_v3 = vld [vmem:[%s3999_s5 + $0x40] sm:$0xff] }
 0x6de   :  { %3287 = vmatprep.subr.bf16.mxu0 %v3286_v13 }
 0x6e0   :  { %v2630_v27 = vpop.permute.xlu1 %2629 }
 0x6e1   :  { %v2640_v28 = vsel %vm2638_vm4, %v2637_v50, %v2630_v27  ;;  %3289 = vmatpush3.bf16.msra.mxu0 %v3286_v13  ;;  %v2884_v50 = vld [vmem:[%s3999_s5 + $0x48] sm:$0xff] }
 0x6e2   :  { %3206 = vmatmul.mubr.msk.f32.vlgmr.msra.gmra.mrb[20].mxu1 %vm27_vm0, %v2640_v28  ;;  %3291 = vmatprep.subr.bf16.mxu0 %v3290_v2  ;;  %v3294_v27 = vpack.c.bf16 %v2884_v50, %v2883_v3  ;;  %v2885_v28 = vld [vmem:[%s3999_s5 + $0x50] sm:$0xff] }
 0x6e3   :  { %3273 = vmatpush3.bf16.msra.mxu1 %v3270_v43 }
 0x6e4   :  { %3275 = vmatprep.subr.bf16.mxu1 %v3274_v16 }
 0x6e5   :  { %3293 = vmatpush3.bf16.msra.mxu0 %v3290_v2 }
 0x6e6   :  { %3295 = vmatprep.subr.bf16.mxu0 %v3294_v27 }
 0x6e7   :  { %3277 = vmatpush3.bf16.msra.mxu1 %v3274_v16 }
 0x6e9   :  { %3297 = vmatpush3.bf16.msra.mxu0 %v3294_v27 }
 0x7b5   :  { %v3207_v6 = vpop.f32.mrb[20].mxu1 }
 0x7b6   :  { %v2727_v44 = vadd.f32 %v3207_v6, %v2648_v38  ;;  %v2721_v47 = vpop.f32.mrb[21].mxu1  ;;  %v2887_v6 = vld [vmem:[%s3999_s5 + $0x60] sm:$0xff] }
 0x7b7   :  { %v2722_v56 = vadd.f32 %v2721_v47, %v2648_v38  ;;  %v3298_v38 = vpack.c.bf16 %v2886_v42, %v2885_v28 }
 0x7b8   :  { %v3892_v60 = vadd.f32 %v3373_v58, %v2727_v44  ;;  %v2888_v44 = vld [vmem:[%s3999_s5 + $0x68] sm:$0xff]  ;;  %v2890_v58 = vld [vmem:[%s3999_s5 + $0x78] sm:$0xff] }
 0x7b9   :  { %v3897_v63 = vadd.f32 %v3374_v62, %v2722_v56  ;;  %3299 = vmatprep.subr.bf16.mxu0 %v3298_v38  ;;  %v3302_v47 = vpack.c.bf16 %v2888_v44, %v2887_v6  ;;  %v2889_v56 = vld [vmem:[%s3999_s5 + $0x70] sm:$0xff]  ;;  %s3411_s5 = smov [#allocation2]  }
 0x7ba   :  { %v2735_v7 = vsel %vm27_vm0, %v3892_v60, 0.0  ;;  %3301 = vmatpush3.bf16.msra.mxu0 %v3298_v38  ;;  %v3306_v62 = vpack.c.bf16 %v2890_v58, %v2889_v56  ;;  %s2979_s16 = sshll.u32 %s3411_s5, 4  ;;  %s2980_s16 = int_to_ptr.vmem [resolvable:$true] %s2979_s16 }
 0x7bb   :  { %2736 = vadd.xlane.f32.xlu1 %v2735_v7  ;;  %v2732_v8 = vsel %vm27_vm0, %v3897_v63, 0.0  ;;  %3303 = vmatprep.subr.bf16.mxu0 %v3302_v47  ;;  %v2776_v7 = vsub.s32 6, %v3470_v26  ;;  %s3375_s17 = scalar_lea.vmem %s2980_s16, 256  ;;  %p3380_p1 = scmp.lt.s32.totalorder %s2980_s16, %s2980_s16 }
 0x7bc   :  { %2733 = vadd.xlane.f32.xlu0 %v2732_v8  ;;  %p3376_p0 = scmp.ne.s32.totalorder %s2980_s16, %s3375_s17  ;;  %p3381_p2 = scmp.lt.s32.totalorder %s3375_s17, %s3375_s17 }
 0x7bd   :  { %v2777_v8 = vrot.slane %v3886_v45, %v2776_v7 }
 0x7be   :  { %3305 = vmatpush3.bf16.msra.mxu0 %v3302_v47  ;;  %p3382_p3 = por %p3381_p2, %p3380_p1 }
 0x7bf   :  { %3307 = vmatprep.subr.bf16.mxu0 %v3306_v62 }
 0x7c0   :  { %p3383_p4 = pnand %p3382_p3, %p3376_p0 }
 0x7c2   :  { %3309 = vmatpush3.bf16.msra.mxu0 %v3306_v62 }
 0x848   :  { %v2737_v9 = vpop.xlane.xlu1 %2736 }
 0x849   :  { %v2739_v10 = vmul.f32 0.03125, %v2737_v9  ;;  %v2734_v51 = vpop.xlane.xlu0 %2733 }
 0x84a   :  { %v2738_v11 = vmul.f32 0.03125, %v2734_v51 }
 0x84b   :  { %v2741_v52 = vsub.f32 %v3892_v60, %v2739_v10 }
 0x84c   :  { %v2740_v57 = vsub.f32 %v3897_v63, %v2738_v11 }
 0x84d   :  { %v2743_v53 = vmul.f32 %v2741_v52, %v2741_v52 }
 0x84e   :  { %v2742_v33 = vmul.f32 %v2740_v57, %v2740_v57 }
 0x84f   :  { %v2747_v4 = vsel %vm27_vm0, %v2743_v53, 0.0 }
 0x850   :  { %v2744_v46 = vsel %vm27_vm0, %v2742_v33, 0.0 }
 0x851   :  { %2745 = vadd.xlane.f32.xlu0 %v2744_v46 }
 0x855   :  { %2748 = vadd.xlane.f32.xlu0 %v2747_v4 }
 0x8de   :  { %v2746_v17 = vpop.xlane.xlu0 %2745 }
 0x8df   :  { %v2750_v18 = vmul.f32 0.03125, %v2746_v17  ;;  %v2893_v17 = vsub.s32 7, %v3470_v26 }
 0x8e1   :  { %v2752_v54 = vadd.f32 1e-05, %v2750_v18  ;;  %v2894_v18 = vrot.slane %v3886_v45, %v2893_v17 }
 0x8e2   :  { %v2749_v19 = vpop.xlane.xlu0 %2748 }
 0x8e3   :  { %3360 = vrsqrt.f32 %v2752_v54  ;;  %v2751_v20 = vmul.f32 0.03125, %v2749_v19 }
 0x8e5   :  { %v2753_v21 = vadd.f32 1e-05, %v2751_v20 }
 0x8e7   :  { %3362 = vrsqrt.f32 %v2753_v21 }
 0x8ed   :  { %v3361_v29 = vpop.eup %3360 }
 0x8ee   :  { %v2756_v59 = vmul.f32 %v3361_v29, %v2740_v57 }
 0x8f0   :  { %v2762_v30 = vmul.f32 %v2761_v25, %v2756_v59 }
 0x8f1   :  { %v3363_v31 = vpop.eup %3362 }
 0x8f2   :  { %v2757_v32 = vmul.f32 %v3363_v31, %v2741_v52  ;;  %v2768_v55 = vadd.f32 %v2767_v24, %v2762_v30 }
 0x8f4   :  { %v2763_v34 = vmul.f32 %v2761_v25, %v2757_v32  ;;  %3216 = vmatprep.mubr.msk.f32.mxu1 %vm27_vm0, %v2768_v55 }
 0x8f6   :  { %v2769_v35 = vadd.f32 %v2767_v24, %v2763_v34 }
 0x8f8   :  { %3217 = vmatmul.mubr.msk.f32.vlgmr.msra.gmra.mrb[22].mxu1 %vm27_vm0, %v2769_v35 }
 0x9cb   :  { %v3218_v9 = vpop.f32.mrb[22].mxu1 }
 0x9cc   :  { %v2856_v10 = vadd.f32 %v3218_v9, %v2777_v8  ;;  %v2850_v51 = vpop.f32.mrb[23].mxu1 }
 0x9cd   :  { %v2851_v11 = vadd.f32 %v2850_v51, %v2777_v8 }
 0x9ce   :  { %v3037_v52 = vmul.f32 -1.702, %v2856_v10 }
 0x9cf   :  { %v3036_v57 = vmul.f32 -1.702, %v2851_v11 }
 0x9d0   :  { %v2865_v33 = vmul.f32 1.442695, %v3037_v52 }
 0x9d1   :  { %v2863_v46 = vmul.f32 1.442695, %v3036_v57 }
 0x9d2   :  { %3364 = vpow2.f32 %v2865_v33 }
 0x9d3   :  { %3366 = vpow2.f32 %v2863_v46 }
 0x9dc   :  { %v3365_v53 = vpop.eup %3364 }
 0x9dd   :  { %v3367_v4 = vpop.eup %3366  ;;  %v2868_v61 = vadd.f32 1.0, %v3365_v53 }
 0x9de   :  { %v2867_v41 = vadd.f32 1.0, %v3367_v4 }
 0x9df   :  { %3368 = vrcp.f32 %v2868_v61 }
 0x9e0   :  { %3370 = vrcp.f32 %v2867_v41 }
 0x9e9   :  { %v3369_v15 = vpop.eup %3368 }
 0x9ea   :  { %v3371_v43 = vpop.eup %3370  ;;  %v2874_v16 = vmul.f32 %v3369_v15, %v2856_v10 }
 0x9eb   :  { %v2873_v12 = vmul.f32 %v3371_v43, %v2851_v11 }
 0x9ed   :  { %3251 = vmatprep.mubr.f32.mxu0 %v2873_v12 }
 0x9ee   :  { %3252 = vmatmul.mubr.f32.vlgmr.msra.gmra.mrb[14].mxu0 %v2874_v16 }
 0xac1   :  { %v3253_v54 = vpop.f32.mrb[14].mxu0 }
 0xac2   :  { %v2967_v19 = vadd.f32 %v3253_v54, %v2894_v18  ;;  %v2961_v20 = vpop.f32.mrb[15].mxu0 }
 0xac3   :  { %v2962_v21 = vadd.f32 %v2961_v20, %v2894_v18 }
 0xac4   :  { %v2971_v22 = vadd.f32 %v2967_v19, %v3892_v60 }
 0xac5   :  { %v2970_v23 = vadd.f32 %v2962_v21, %v3897_v63 }
 0xac6   :  { %2973 = vst.msk [vmem:[#allocation2 + $0x8] sm:$0xff] %vm27_vm0, %v2971_v22 }
 0xac7   :  { %2972 = vst.msk [vmem:[#allocation2] sm:$0xff] %vm27_vm0, %v2970_v23 }
 0xac8   :  { %3386 = shalt.err (!%p3383_p4)
}
 0xac9   :  { %s3387_s20 = scalar_lea.hbm %s4000_s6, 256 }
 0xaca   :  { %p3388_p5 = scmp.ne.s32.totalorder %s4000_s6, %s3387_s20  ;;  %p3391_p6 = scmp.lt.u32.totalorder %s3387_s20, %s4000_s6 }
 0xacc   :  { %p3393_p7 = pnand %p3391_p6, %p3388_p5 }
 0xace   :  { %3396 = shalt.err (!%p3393_p7)
}
 0xacf   :  { %s3412_s25 = smov 128  }
 0xad0   :  { %2985 = dma.vmem_to_hbm [thread:$0]  %s2980_s16, 256, %s4000_s6, [#allocation3], %s3412_s25, %s3412_s25, %s3408_s15  }
 0xad1   :  { %3397 = dma.done.wait [#allocation3], 256  }
 0xad2   :  { %3398 = vsyncadd [#allocation3], 4294967040 }
 0xad3   :  { %2989 = vsyncpa [#allocation3], 1 }

</bundles_post_ra>
